<compile_context>
chip_gen: v6e
topology: v6e:2x2x1
jax: 0.10.0
libtpu: 0.0.40
codegen_flags: <defaults>
</compile_context>

<pallas_src>
import jax
import jax.numpy as jnp
from jax.experimental import pallas as pl
from jax.experimental.pallas import tpu as pltpu


def attention_kernel(x_ref, w1_ref, b1_ref, w2_ref, b2_ref, out_ref):
    # fc1: (TN, 3*d_h) @ (3*d_h, d_h) + (1, d_h)
    x = x_ref[...]
    h = jnp.dot(x, w1_ref[...], preferred_element_type=jnp.float32) + b1_ref[...]
    # ReLU
    h = jnp.maximum(h, 0.0)
    # fc2: (TN, d_h) @ (d_h, 3) + (1, 3)
    logits = (
        jnp.dot(h, w2_ref[...], preferred_element_type=jnp.float32) + b2_ref[...]
    )
    # softmax over the last dim (PyTorch dim=1 for 2-D input)
    m = jnp.max(logits, axis=-1, keepdims=True)
    e = jnp.exp(logits - m)
    denom = jnp.sum(e, axis=-1, keepdims=True)
    out_ref[...] = (e * pl.reciprocal(denom, approx=False)).astype(out_ref.dtype)


def _row_tile(n_rows, tn):
    """Row tile: multiple of 8, <= tn, and >= 2 tiles whenever n_rows >= 16."""
    tn = max(8, (int(tn) // 8) * 8)
    if n_rows < 8:
        # Tiny input: full-extent block (second-minor dim == array dim is legal).
        return n_rows
    if n_rows >= 16:
        # Keep at least two row tiles so multi-core parts (v7x) can shard the
        # "parallel" grid axis across TensorCores.
        half = (((n_rows + 1) // 2) + 7) // 8 * 8
        tn = min(tn, half)
    return min(tn, (n_rows // 8) * 8)


def _vmem_limit_bytes(tile_n, d_in, d_h):
    """Scoped-VMEM budget for the double-buffered pipeline (with headroom)."""
    f32 = 4
    in_block = tile_n * d_in * f32
    out_block = tile_n * 128 * f32  # (tile_n, 3) lane-pads to 128 lanes in VMEM
    params = (d_in * max(d_h, 128) + 2 * 8 * 128 + max(d_h, 8) * 128) * f32
    need = 2 * (in_block + out_block + params)  # 2-deep buffering
    return int(min(need + (4 << 20), 64 << 20))


def attention_module(x, w1, b1, w2, b2, *, tn=4096):
    """x: (N, 3*d_h) float32.  Returns alpha: (N, 3) float32.

    Rows are streamed through VMEM in tiles of `tn` (rounded to a multiple of
    8); the final partial tile is clipped by Pallas — no padding copy of x.
    """
    N, D_in = x.shape
    d_h = w1.shape[1]
    assert D_in == 3 * d_h

    tile_n = _row_tile(N, tn)
    grid = (pl.cdiv(N, tile_n),)

    return pl.pallas_call(
        attention_kernel,
        out_shape=jax.ShapeDtypeStruct((N, 3), jnp.float32),
        grid=grid,
        in_specs=[
            # Streamed row tile of the input (double-buffered by Pallas).
            pl.BlockSpec((tile_n, D_in), lambda i: (i, 0)),
            # Weights / biases: constant block index -> stay resident in VMEM.
            pl.BlockSpec((D_in, d_h), lambda i: (0, 0)),
            pl.BlockSpec((1, d_h), lambda i: (0, 0)),
            pl.BlockSpec((d_h, 3), lambda i: (0, 0)),
            pl.BlockSpec((1, 3), lambda i: (0, 0)),
        ],
        out_specs=pl.BlockSpec((tile_n, 3), lambda i: (i, 0)),
        compiler_params=pltpu.CompilerParams(
            dimension_semantics=("parallel",),
            vmem_limit_bytes=_vmem_limit_bytes(tile_n, D_in, d_h),
        ),
    )(x, w1, b1, w2, b2)


def init_params(key, d_h):
    """Deterministic synthetic init matching nn.Linear shapes.

    PyTorch stores fc1.weight as (d_h, 3*d_h); we store the transpose
    (3*d_h, d_h) so the kernel can do x @ W directly.
    """
    k1, k2, k3, k4 = jax.random.split(key, 4)
    bound1 = 1.0 / jnp.sqrt(3.0 * d_h)
    bound2 = 1.0 / jnp.sqrt(float(d_h))
    w1 = jax.random.uniform(k1, (3 * d_h, d_h), jnp.float32, -bound1, bound1)
    b1 = jax.random.uniform(k2, (1, d_h), jnp.float32, -bound1, bound1)
    w2 = jax.random.uniform(k3, (d_h, 3), jnp.float32, -bound2, bound2)
    b2 = jax.random.uniform(k4, (1, 3), jnp.float32, -bound2, bound2)
    return w1, b1, w2, b2


def _reference(x, w1, b1, w2, b2):
    h = jnp.maximum(x @ w1 + b1, 0.0)
    return jax.nn.softmax(h @ w2 + b2, axis=1)


if __name__ == "__main__":
    d_h = 32
    N = 8  # number of "nodes" / rows

    key = jax.random.PRNGKey(0)
    k_x, k_p, k_x2 = jax.random.split(key, 3)
    x = jax.random.normal(k_x, (N, 3 * d_h), dtype=jnp.float32)
    w1, b1, w2, b2 = init_params(k_p, d_h)

    # 1) Single-tile path.
    alpha = attention_module(x, w1, b1, w2, b2)
    alpha = jax.block_until_ready(alpha)
    alpha_ref = _reference(x, w1, b1, w2, b2)
    assert alpha.shape == (N, 3)
    assert jnp.allclose(alpha, alpha_ref, atol=1e-5, rtol=1e-5)
    assert jnp.allclose(jnp.sum(alpha, axis=1), 1.0, atol=1e-5)

    # 2) Multi-tile path with a clipped partial final block (no wrapper pad):
    #    N2=20 with the default tile logic -> 2 tiles of 16 rows, last clipped.
    N2 = 20
    x2 = jax.random.normal(k_x2, (N2, 3 * d_h), dtype=jnp.float32)
    alpha2 = attention_module(x2, w1, b1, w2, b2)
    alpha2 = jax.block_until_ready(alpha2)
    alpha2_ref = _reference(x2, w1, b1, w2, b2)
    assert alpha2.shape == (N2, 3)
    assert jnp.allclose(alpha2, alpha2_ref, atol=1e-5, rtol=1e-5)
    assert jnp.allclose(jnp.sum(alpha2, axis=1), 1.0, atol=1e-5)

    # 3) Small explicit tile (tn=8) -> 3 grid steps, exercises the pipeline.
    alpha3 = attention_module(x2, w1, b1, w2, b2, tn=8)
    alpha3 = jax.block_until_ready(alpha3)
    assert jnp.allclose(alpha3, alpha2_ref, atol=1e-5, rtol=1e-5)

    print("KERNEL_OK")
</pallas_src>

<mosaic_0001>
module attributes {stable_mosaic.version = 11 : i64} {
  func.func @attention_kernel(%arg0: i32, %arg1: memref<8x96xf32, #tpu.memory_space<vmem>>, %arg2: memref<96x32xf32, #tpu.memory_space<vmem>>, %arg3: memref<1x32xf32, #tpu.memory_space<vmem>>, %arg4: memref<32x3xf32, #tpu.memory_space<vmem>>, %arg5: memref<1x3xf32, #tpu.memory_space<vmem>>, %arg6: memref<8x3xf32, #tpu.memory_space<vmem>>) attributes {dimension_semantics = [#tpu.dimension_semantics<parallel>], iteration_bounds = array<i64: 1>, scalar_prefetch = 0 : i64, scratch_operands = 0 : i64, tpu.core_type = #tpu.core_type<tc>, window_params = [{transform_indices = @transform_0, window_bounds = array<i64: 8, 96>}, {pipeline_mode = #tpu.pipeline_mode<synchronous>, transform_indices = @transform_1, window_bounds = array<i64: 96, 32>}, {pipeline_mode = #tpu.pipeline_mode<synchronous>, transform_indices = @transform_2, window_bounds = array<i64: 1, 32>}, {pipeline_mode = #tpu.pipeline_mode<synchronous>, transform_indices = @transform_3, window_bounds = array<i64: 32, 3>}, {pipeline_mode = #tpu.pipeline_mode<synchronous>, transform_indices = @transform_4, window_bounds = array<i64: 1, 3>}, {transform_indices = @transform_5, window_bounds = array<i64: 8, 3>}]} {
    %c0 = arith.constant 0 : index
    %c0_0 = arith.constant 0 : index
    %0 = vector.load %arg1[%c0, %c0_0] : memref<8x96xf32, #tpu.memory_space<vmem>>, vector<8x96xf32>
    %c0_1 = arith.constant 0 : index
    %c0_2 = arith.constant 0 : index
    %1 = vector.load %arg2[%c0_1, %c0_2] : memref<96x32xf32, #tpu.memory_space<vmem>>, vector<96x32xf32>
    %cst = arith.constant dense<0.000000e+00> : vector<8x32xf32>
    %2 = tpu.matmul %0, %1, %cst {dimension_numbers = #tpu.dot_dimension_numbers<[1], [0], [0], [1], [0, 0, 1, 1], [], []>} : vector<8x96xf32>, vector<96x32xf32>, vector<8x32xf32> -> vector<8x32xf32>
    %c0_3 = arith.constant 0 : index
    %c0_4 = arith.constant 0 : index
    %3 = vector.load %arg3[%c0_3, %c0_4] : memref<1x32xf32, #tpu.memory_space<vmem>>, vector<1x32xf32>
    %4 = vector.broadcast %3 : vector<1x32xf32> to vector<8x32xf32>
    %5 = arith.addf %2, %4 : vector<8x32xf32>
    %cst_5 = arith.constant 0.000000e+00 : f32
    %6 = vector.broadcast %cst_5 : f32 to vector<8x32xf32>
    %7 = arith.maximumf %5, %6 : vector<8x32xf32>
    %c0_6 = arith.constant 0 : index
    %c0_7 = arith.constant 0 : index
    %8 = vector.load %arg4[%c0_6, %c0_7] : memref<32x3xf32, #tpu.memory_space<vmem>>, vector<32x3xf32>
    %cst_8 = arith.constant dense<0.000000e+00> : vector<8x3xf32>
    %9 = tpu.matmul %7, %8, %cst_8 {dimension_numbers = #tpu.dot_dimension_numbers<[1], [0], [0], [1], [0, 0, 1, 1], [], []>} : vector<8x32xf32>, vector<32x3xf32>, vector<8x3xf32> -> vector<8x3xf32>
    %c0_9 = arith.constant 0 : index
    %c0_10 = arith.constant 0 : index
    %10 = vector.load %arg5[%c0_9, %c0_10] : memref<1x3xf32, #tpu.memory_space<vmem>>, vector<1x3xf32>
    %11 = vector.broadcast %10 : vector<1x3xf32> to vector<8x3xf32>
    %12 = arith.addf %9, %11 : vector<8x3xf32>
    %cst_11 = arith.constant dense<0xFF800000> : vector<8xf32>
    %13 = vector.multi_reduction <maximumf>, %12, %cst_11 [1] : vector<8x3xf32> to vector<8xf32>
    %14 = vector.shape_cast %13 : vector<8xf32> to vector<8x1xf32>
    %15 = vector.broadcast %14 : vector<8x1xf32> to vector<8x3xf32>
    %16 = arith.subf %12, %15 : vector<8x3xf32>
    %17 = math.exp %16 : vector<8x3xf32>
    %cst_12 = arith.constant dense<0.000000e+00> : vector<8xf32>
    %18 = vector.multi_reduction <add>, %17, %cst_12 [1] : vector<8x3xf32> to vector<8xf32>
    %19 = vector.shape_cast %18 : vector<8xf32> to vector<8x1xf32>
    %20 = tpu.reciprocal %19 : vector<8x1xf32> -> vector<8x1xf32>
    %21 = vector.broadcast %20 : vector<8x1xf32> to vector<8x3xf32>
    %22 = arith.mulf %17, %21 : vector<8x3xf32>
    %c0_13 = arith.constant 0 : index
    %c0_14 = arith.constant 0 : index
    %23 = vector.load %arg6[%c0_13, %c0_14] : memref<8x3xf32, #tpu.memory_space<vmem>>, vector<8x3xf32>
    tpu.vector_store %arg6[%c0_13, %c0_14], %22 {strides = array<i32>} : memref<8x3xf32, #tpu.memory_space<vmem>>, vector<8x3xf32>,
    return
  }
  func.func @transform_0(%arg0: i32) -> (i32, i32) {
    %c0_i32 = arith.constant 0 : i32
    %c0_i32_0 = arith.constant 0 : i32
    return %arg0, %c0_i32 : i32, i32
  }
  func.func @transform_1(%arg0: i32) -> (i32, i32) {
    %c0_i32 = arith.constant 0 : i32
    %c0_i32_0 = arith.constant 0 : i32
    %c0_i32_1 = arith.constant 0 : i32
    return %c0_i32, %c0_i32_0 : i32, i32
  }
  func.func @transform_2(%arg0: i32) -> (i32, i32) {
    %c0_i32 = arith.constant 0 : i32
    %c0_i32_0 = arith.constant 0 : i32
    %c0_i32_1 = arith.constant 0 : i32
    return %c0_i32, %c0_i32_0 : i32, i32
  }
  func.func @transform_3(%arg0: i32) -> (i32, i32) {
    %c0_i32 = arith.constant 0 : i32
    %c0_i32_0 = arith.constant 0 : i32
    %c0_i32_1 = arith.constant 0 : i32
    return %c0_i32, %c0_i32_0 : i32, i32
  }
  func.func @transform_4(%arg0: i32) -> (i32, i32) {
    %c0_i32 = arith.constant 0 : i32
    %c0_i32_0 = arith.constant 0 : i32
    %c0_i32_1 = arith.constant 0 : i32
    return %c0_i32, %c0_i32_0 : i32, i32
  }
  func.func @transform_5(%arg0: i32) -> (i32, i32) {
    %c0_i32 = arith.constant 0 : i32
    %c0_i32_0 = arith.constant 0 : i32
    return %arg0, %c0_i32 : i32, i32
  }
}

</mosaic_0001>

<bundles_post_ra>
// kernel: tpu_custom_call.1
= control target key start
LH: loop header
LB: loop body
LE: loop exit
PB: predicated region body
PF: predicated region fallthrough
CT: control target
= control target key end

     0   :  { %v283_v0 = vmov 0.0   ;;  %vm284_vm0 = vmmov 0   ;;  %vm40_vm1 = vcmask 785408   ;;  %vm126_vm2 = vcmask 261120   ;;  %s378_s1 = inlined_call_operand.vmem [shape: f32[96,32], index: 1, kind: input, shape index: {}]   ;;  %s379_s3 = inlined_call_operand.vmem [shape: f32[32,3], index: 3, kind: input, shape index: {}]   ;;  %s380_s0 = inlined_call_operand.vmem [shape: f32[8,96], index: 0, kind: input, shape index: {}]   ;;  %s381_s2 = inlined_call_operand.vmem [shape: f32[1,32], index: 2, kind: input, shape index: {}]   ;;  %s382_s4 = inlined_call_operand.vmem [shape: f32[1,3], index: 4, kind: input, shape index: {}]   ;;  %s383_s5 = inlined_call_operand.vmem [shape: f32[8,3], index: 5, kind: output, shape index: {}]  }
   0x1   :  { %239 = vmatprep.subr.mxu0 %v283_v0  ;;  %v32_v1 = vld [vmem:[%s378_s1 + $0x58] sm:$0xff]  ;;  %v31_v2 = vld [vmem:[%s378_s1 + $0x50] sm:$0xff]  ;;  %263 = vmatprep.mubr.msk.f32.mxu0 %vm284_vm0, %v283_v0  ;;  %v30_v3 = vld [vmem:[%s378_s1 + $0x48] sm:$0xff]  ;;  %vm200_vm3 = vcmask 23552  }
   0x2   :  { %240 = vmatpush3.msra.mxu0 %v32_v1  ;;  %266 = vmatprep.subr.mxu1 %v283_v0  ;;  %v29_v4 = vld [vmem:[%s378_s1 + $0x40] sm:$0xff]  ;;  %v118_v5 = vld [vmem:[%s379_s3 + $0x18] sm:$0xff]  ;;  %v27_v7 = vld [vmem:[%s378_s1 + $0x30] sm:$0xff] }
   0x3   :  { %241 = vmatprep.subr.mxu0 %v283_v0  ;;  %274 = vmatprep.mubr.msk.f32.mxu1 %vm284_vm0, %v283_v0  ;;  %v28_v6 = vld [vmem:[%s378_s1 + $0x38] sm:$0xff]  ;;  %v26_v8 = vld [vmem:[%s378_s1 + $0x28] sm:$0xff]  ;;  %v25_v9 = vld [vmem:[%s378_s1 + $0x20] sm:$0xff] }
   0x4   :  { %242 = vmatpush3.msra.mxu0 %v31_v2  ;;  %267 = vmatpush3.msra.mxu1 %v118_v5  ;;  %v24_v10 = vld [vmem:[%s378_s1 + $0x18] sm:$0xff]  ;;  %v23_v11 = vld [vmem:[%s378_s1 + $0x10] sm:$0xff]  ;;  %v22_v12 = vld [vmem:[%s378_s1 + $0x8] sm:$0xff] }
   0x5   :  { %243 = vmatprep.subr.mxu0 %v283_v0  ;;  %268 = vmatprep.subr.mxu1 %v283_v0  ;;  %v21_v13 = vld [vmem:[%s378_s1] sm:$0xff]  ;;  %v117_v15 = vld [vmem:[%s379_s3 + $0x10] sm:$0xff]  ;;  %v116_v16 = vld [vmem:[%s379_s3 + $0x8] sm:$0xff] }
   0x6   :  { %244 = vmatpush3.msra.mxu0 %v30_v3  ;;  %v20_v14 = vld [vmem:[%s380_s0] sm:$0xff]  ;;  %269 = vmatpush3.msra.mxu1 %v117_v15 }
   0x7   :  { %245 = vmatprep.subr.mxu0 %v283_v0  ;;  %270 = vmatprep.subr.mxu1 %v283_v0  ;;  %v115_v17 = vld [vmem:[%s379_s3] sm:$0xff] }
   0x8   :  { %246 = vmatpush3.msra.mxu0 %v29_v4  ;;  %271 = vmatpush3.msra.mxu1 %v116_v16  ;;  %v217_v18 = vld [vmem:[%s381_s2] ss:$0 sm:$0xff] }
   0x9   :  { %247 = vmatprep.subr.mxu0 %v283_v0  ;;  %272 = vmatprep.subr.mxu1 %v283_v0  ;;  %v219_v23 = vld [vmem:[%s382_s4] ss:$0 sm:$0xff] }
   0xa   :  { %248 = vmatpush3.msra.mxu0 %v28_v6  ;;  %273 = vmatpush3.msra.mxu1 %v115_v17 }
   0xb   :  { %249 = vmatprep.subr.mxu0 %v283_v0 }
   0xc   :  { %250 = vmatpush3.msra.mxu0 %v27_v7 }
   0xd   :  { %251 = vmatprep.subr.mxu0 %v283_v0 }
   0xe   :  { %252 = vmatpush3.msra.mxu0 %v26_v8 }
   0xf   :  { %253 = vmatprep.subr.mxu0 %v283_v0 }
  0x10   :  { %254 = vmatpush3.msra.mxu0 %v25_v9 }
  0x11   :  { %255 = vmatprep.subr.mxu0 %v283_v0 }
  0x12   :  { %256 = vmatpush3.msra.mxu0 %v24_v10 }
  0x13   :  { %257 = vmatprep.subr.mxu0 %v283_v0 }
  0x14   :  { %258 = vmatpush3.msra.mxu0 %v23_v11 }
  0x15   :  { %259 = vmatprep.subr.mxu0 %v283_v0 }
  0x16   :  { %260 = vmatpush3.msra.mxu0 %v22_v12 }
  0x17   :  { %261 = vmatprep.subr.mxu0 %v283_v0 }
  0x18   :  { %262 = vmatpush3.msra.mxu0 %v21_v13 }
  0x19   :  { %264 = vmatmul.mubr.msk.f32.vlgmr.msra.gmra.mxu0 %vm40_vm1, %v20_v14 }
  0xd9   :  { %v110_v19 = vpop.f32.mrf.mxu0 }
  0xda   :  { %v111_v20 = vadd.f32 %v217_v18, %v110_v19 }
  0xdb   :  { %v265_v21 = vpop.f32.mrf.mxu0 }
  0xdc   :  { %v114_v22 = vmax.f32 %v111_v20, 0.0 }
  0xde   :  { %275 = vmatmul.mubr.msk.f32.vlgmr.msra.gmra.mxu1 %vm126_vm2, %v114_v22 }
 0x19e   :  { %v196_v24 = vpop.f32.mrf.mxu1 }
 0x19f   :  { %v197_v25 = vadd.f32 %v219_v23, %v196_v24 }
 0x1a0   :  { %v276_v26 = vpop.f32.mrf.mxu1 }
 0x1a1   :  { %v201_v27 = vsel %vm200_vm3, %v197_v25, -inf }
 0x1a2   :  { %202 = vmax.xlane.f32.xlu0 %v201_v27 }
 0x22b   :  { %v203_v28 = vpop.xlane.xlu0 %202 }
 0x22c   :  { %v204_v29 = vsub.f32 %v197_v25, %v203_v28 }
 0x22e   :  { %v205_v30 = vmul.f32 1.442695, %v204_v29 }
 0x230   :  { %279 = vpow2.f32 %v205_v30 }
 0x23d   :  { %v280_v31 = vpop.eup %279 }
 0x23e   :  { %v207_v32 = vsel %vm200_vm3, %v280_v31, 0.0 }
 0x23f   :  { %208 = vadd.xlane.f32.xlu0 %v207_v32 }
 0x2c8   :  { %v209_v33 = vpop.xlane.xlu0 %208 }
 0x2c9   :  { %281 = vrcp.f32 %v209_v33 }
 0x2d6   :  { %v282_v34 = vpop.eup %281 }
 0x2d7   :  { %v211_v35 = vmul.f32 %v282_v34, %v280_v31 }
 0x2d9   :  { %212 = vst.msk [vmem:[%s383_s5] sm:$0xff] %vm200_vm3, %v211_v35 }

</bundles_post_ra>
